<compile_context>
chip_gen: v6e
topology: v6e:2x2x1
jax: 0.10.0
libtpu: 0.0.40
codegen_flags: <defaults>
</compile_context>

<pallas_src>
import functools
import math

import jax
import jax.numpy as jnp
import numpy as np
from jax import lax
from jax.experimental import pallas as pl
from jax.experimental.pallas import tpu as pltpu


def mha_kernel(x_ref, wq_ref, wk_ref, wv_ref, wp_ref, bp_ref, bm_ref, nm_ref,
               o_ref, *, T, C, H):
    """One batch row per grid step.

    x_ref:  (1, T, C)    bf16  activations for this batch element
    wq/wk/wv_ref: (C, C) bf16  head-major transposed weights (wq pre-scaled)
    wp_ref: (C, C)       bf16  output projection, pre-transposed
    bp_ref: (1, C)       f32   output projection bias
    bm_ref: (H*T, C)     f32   1 where lane head-block == row head-block, else 0
    nm_ref: (H*T, H*T)   f32   0 on diagonal (T,T) blocks, -1e30 elsewhere
    o_ref:  (1, T, C)    f32
    """
    x = x_ref[0]                                              # (T, C) bf16

    # Tile x across heads along SUBLANES: row h*T+t holds x[t].  Heads index the
    # row/sublane axis only; nothing below slices along lanes.
    xt = jnp.concatenate([x] * H, axis=0)                     # (H*T, C) bf16

    bm = bm_ref[...]                                          # (H*T, C) f32

    # Full-width projections (one MXU push each, K = C).  The multiplicative
    # block mask puts Q and V into head-stacked block-diagonal form; K is left
    # unmasked because the additive mask below kills cross-head score blocks.
    q = (jnp.dot(xt, wq_ref[...], preferred_element_type=jnp.float32) * bm
         ).astype(jnp.bfloat16)                               # (H*T, C)
    k = jnp.dot(xt, wk_ref[...],
                preferred_element_type=jnp.float32).astype(jnp.bfloat16)
    v = (jnp.dot(xt, wv_ref[...], preferred_element_type=jnp.float32) * bm
         ).astype(jnp.bfloat16)                               # (H*T, C)

    # All H heads' scores in ONE MXU push; diagonal (T,T) blocks hold q_h@k_h^T.
    s = lax.dot_general(q, k, (((1,), (1,)), ((), ())),
                        preferred_element_type=jnp.float32)   # (H*T, H*T) f32
    s = s + nm_ref[...]                      # block-diag mask BEFORE the row max
    s = s - jnp.max(s, axis=-1, keepdims=True)
    p = jnp.exp(s)                                            # f32 intermediates
    p = p / jnp.sum(p, axis=-1, keepdims=True)                # exact normalization

    # All heads' attention-weighted values in ONE MXU push.  The result is
    # block-diagonal: row block h is nonzero only in lane block h.
    o = jnp.dot(p.astype(jnp.bfloat16), v,
                preferred_element_type=jnp.float32)           # (H*T, C) f32

    # Collapse head row-blocks -> the concatenated (T, C) head outputs.
    # Off-block lanes are exactly zero, so this sum IS the concat, not a mix.
    cat = o[0:T, :]
    for h in range(1, H):
        cat = cat + o[h * T:(h + 1) * T, :]                   # aligned sublane slices

    # Single K=C output projection + bias, one store per grid step.
    y = jnp.dot(cat.astype(jnp.bfloat16), wp_ref[...],
                preferred_element_type=jnp.float32)           # (T, C) f32
    o_ref[0] = (y + bp_ref[...]).astype(o_ref.dtype)


def multi_head_attention(x, wq, wk, wv, wp, bp, *, n_heads):
    B, T, C = x.shape
    H = n_heads
    hs = C // H
    assert wq.shape == (H, hs, C) and hs * H == C
    scale = C ** -0.5            # module scales by full n_embed (Head.forward)
    HT = H * T

    # --- wrapper-side prep: layout plumbing + bf16 casts (outside the kernel) ---
    wq_t = (wq.reshape(C, C).T * scale).astype(jnp.bfloat16)   # scale folded in
    wk_t = wk.reshape(C, C).T.astype(jnp.bfloat16)
    wv_t = wv.reshape(C, C).T.astype(jnp.bfloat16)
    wp_t = wp.T.astype(jnp.bfloat16)
    bp2 = bp.reshape(1, C).astype(jnp.float32)
    xb = x.astype(jnp.bfloat16)

    # Compile-time constant masks, hoisted out of all kernel work.
    rows = np.arange(HT)[:, None]
    blkmask = jnp.asarray((rows // T == np.arange(C)[None, :] // hs)
                          .astype(np.float32))                              # (HT, C)
    negmask = jnp.asarray(np.where(rows // T == np.arange(HT)[None, :] // T,
                                   0.0, -1e30).astype(np.float32))          # (HT, HT)

    kernel = functools.partial(mha_kernel, T=T, C=C, H=H)

    y = pl.pallas_call(
        kernel,
        out_shape=jax.ShapeDtypeStruct((B, T, C), jnp.float32),
        grid_spec=pltpu.PrefetchScalarGridSpec(
            num_scalar_prefetch=0,
            grid=(B,),
            in_specs=[
                pl.BlockSpec((1, T, C), lambda b: (b, 0, 0)),   # x, per-batch block
                pl.BlockSpec((C, C), lambda b: (0, 0)),         # wq (resident)
                pl.BlockSpec((C, C), lambda b: (0, 0)),         # wk
                pl.BlockSpec((C, C), lambda b: (0, 0)),         # wv
                pl.BlockSpec((C, C), lambda b: (0, 0)),         # wp
                pl.BlockSpec((1, C), lambda b: (0, 0)),         # bias
                pl.BlockSpec((HT, C), lambda b: (0, 0)),        # multiplicative block mask
                pl.BlockSpec((HT, HT), lambda b: (0, 0)),       # additive -1e30 mask
            ],
            out_specs=pl.BlockSpec((1, T, C), lambda b: (b, 0, 0)),
        ),
        compiler_params=pltpu.CompilerParams(
            dimension_semantics=("parallel",)),   # engages the 2nd TensorCore on v7x
    )(xb, wq_t, wk_t, wv_t, wp_t, bp2, blkmask, negmask)

    return y.astype(x.dtype)


def reference_mha(x, wq, wk, wv, wp, bp, *, n_heads):
    """Pure-JAX f32 reference mirroring the PyTorch forward (eval mode)."""
    B, T, C = x.shape
    outs = []
    for h in range(n_heads):
        q = x @ wq[h].T
        k = x @ wk[h].T
        v = x @ wv[h].T
        wei = (q @ jnp.swapaxes(k, -2, -1)) * (C ** -0.5)
        wei = jax.nn.softmax(wei, axis=-1)
        outs.append(wei @ v)
    cat = jnp.concatenate(outs, axis=-1)
    return cat @ wp.T + bp


if __name__ == "__main__":
    # config: n_embed=32, n_heads=4, dropout=0.0 (eval); B=2, T=8
    n_embed, n_heads = 32, 4
    head_size = n_embed // n_heads
    B, T = 2, 8

    key = jax.random.PRNGKey(0)
    kx, kq, kk, kv, kp, kb = jax.random.split(key, 6)

    bound = 1.0 / math.sqrt(n_embed)   # nn.Linear default init bound
    x  = jax.random.normal(kx, (B, T, n_embed), dtype=jnp.float32)
    wq = jax.random.uniform(kq, (n_heads, head_size, n_embed), minval=-bound, maxval=bound, dtype=jnp.float32)
    wk = jax.random.uniform(kk, (n_heads, head_size, n_embed), minval=-bound, maxval=bound, dtype=jnp.float32)
    wv = jax.random.uniform(kv, (n_heads, head_size, n_embed), minval=-bound, maxval=bound, dtype=jnp.float32)
    wp = jax.random.uniform(kp, (n_embed, n_embed), minval=-bound, maxval=bound, dtype=jnp.float32)
    bp = jax.random.uniform(kb, (n_embed,), minval=-bound, maxval=bound, dtype=jnp.float32)

    out = multi_head_attention(x, wq, wk, wv, wp, bp, n_heads=n_heads)
    out = jax.block_until_ready(out)

    ref = reference_mha(x, wq, wk, wv, wp, bp, n_heads=n_heads)
    # Kernel uses bf16 MXU operands (f32 accumulation / f32 softmax), so the
    # tolerance reflects bf16 operand rounding; structural errors would be
    # orders of magnitude larger.  Softmax normalization itself is exact.
    np.testing.assert_allclose(np.asarray(out), np.asarray(ref), rtol=2e-2, atol=2e-2)

    print("KERNEL_OK")
</pallas_src>

<mosaic_0001>
module attributes {stable_mosaic.version = 11 : i64} {
  func.func @mha_kernel(%arg0: i32, %arg1: memref<1x8x32xbf16, #tpu.memory_space<vmem>>, %arg2: memref<32x32xbf16, #tpu.memory_space<vmem>>, %arg3: memref<32x32xbf16, #tpu.memory_space<vmem>>, %arg4: memref<32x32xbf16, #tpu.memory_space<vmem>>, %arg5: memref<32x32xbf16, #tpu.memory_space<vmem>>, %arg6: memref<1x32xf32, #tpu.memory_space<vmem>>, %arg7: memref<32x32xf32, #tpu.memory_space<vmem>>, %arg8: memref<32x32xf32, #tpu.memory_space<vmem>>, %arg9: memref<1x8x32xf32, #tpu.memory_space<vmem>>) attributes {dimension_semantics = [#tpu.dimension_semantics<parallel>], iteration_bounds = array<i64: 2>, scalar_prefetch = 0 : i64, scratch_operands = 0 : i64, tpu.core_type = #tpu.core_type<tc>, window_params = [{transform_indices = @transform_0, window_bounds = array<i64: 1, 8, 32>}, {pipeline_mode = #tpu.pipeline_mode<synchronous>, transform_indices = @transform_1, window_bounds = array<i64: 32, 32>}, {pipeline_mode = #tpu.pipeline_mode<synchronous>, transform_indices = @transform_2, window_bounds = array<i64: 32, 32>}, {pipeline_mode = #tpu.pipeline_mode<synchronous>, transform_indices = @transform_3, window_bounds = array<i64: 32, 32>}, {pipeline_mode = #tpu.pipeline_mode<synchronous>, transform_indices = @transform_4, window_bounds = array<i64: 32, 32>}, {pipeline_mode = #tpu.pipeline_mode<synchronous>, transform_indices = @transform_5, window_bounds = array<i64: 1, 32>}, {pipeline_mode = #tpu.pipeline_mode<synchronous>, transform_indices = @transform_6, window_bounds = array<i64: 32, 32>}, {pipeline_mode = #tpu.pipeline_mode<synchronous>, transform_indices = @transform_7, window_bounds = array<i64: 32, 32>}, {transform_indices = @transform_8, window_bounds = array<i64: 1, 8, 32>}]} {
    %c0 = arith.constant 0 : index
    %c0_0 = arith.constant 0 : index
    %c0_1 = arith.constant 0 : index
    %0 = vector.load %arg1[%c0, %c0_0, %c0_1] : memref<1x8x32xbf16, #tpu.memory_space<vmem>>, vector<1x8x32xbf16>
    %1 = vector.shape_cast %0 : vector<1x8x32xbf16> to vector<8x32xbf16>
    %2 = tpu.concatenate %1, %1, %1, %1 in 0 : vector<8x32xbf16>, vector<8x32xbf16>, vector<8x32xbf16>, vector<8x32xbf16> -> vector<32x32xbf16>
    %c0_2 = arith.constant 0 : index
    %c0_3 = arith.constant 0 : index
    %3 = vector.load %arg7[%c0_2, %c0_3] : memref<32x32xf32, #tpu.memory_space<vmem>>, vector<32x32xf32>
    %c0_4 = arith.constant 0 : index
    %c0_5 = arith.constant 0 : index
    %4 = vector.load %arg2[%c0_4, %c0_5] : memref<32x32xbf16, #tpu.memory_space<vmem>>, vector<32x32xbf16>
    %cst = arith.constant dense<0.000000e+00> : vector<32x32xf32>
    %5 = tpu.matmul %2, %4, %cst {dimension_numbers = #tpu.dot_dimension_numbers<[1], [0], [0], [1], [0, 0, 1, 1], [], []>} : vector<32x32xbf16>, vector<32x32xbf16>, vector<32x32xf32> -> vector<32x32xf32>
    %6 = arith.mulf %5, %3 : vector<32x32xf32>
    %7 = arith.truncf %6 : vector<32x32xf32> to vector<32x32xbf16>
    %c0_6 = arith.constant 0 : index
    %c0_7 = arith.constant 0 : index
    %8 = vector.load %arg3[%c0_6, %c0_7] : memref<32x32xbf16, #tpu.memory_space<vmem>>, vector<32x32xbf16>
    %cst_8 = arith.constant dense<0.000000e+00> : vector<32x32xf32>
    %9 = tpu.matmul %2, %8, %cst_8 {dimension_numbers = #tpu.dot_dimension_numbers<[1], [0], [0], [1], [0, 0, 1, 1], [], []>} : vector<32x32xbf16>, vector<32x32xbf16>, vector<32x32xf32> -> vector<32x32xf32>
    %10 = arith.truncf %9 : vector<32x32xf32> to vector<32x32xbf16>
    %c0_9 = arith.constant 0 : index
    %c0_10 = arith.constant 0 : index
    %11 = vector.load %arg4[%c0_9, %c0_10] : memref<32x32xbf16, #tpu.memory_space<vmem>>, vector<32x32xbf16>
    %cst_11 = arith.constant dense<0.000000e+00> : vector<32x32xf32>
    %12 = tpu.matmul %2, %11, %cst_11 {dimension_numbers = #tpu.dot_dimension_numbers<[1], [0], [0], [1], [0, 0, 1, 1], [], []>} : vector<32x32xbf16>, vector<32x32xbf16>, vector<32x32xf32> -> vector<32x32xf32>
    %13 = arith.mulf %12, %3 : vector<32x32xf32>
    %14 = arith.truncf %13 : vector<32x32xf32> to vector<32x32xbf16>
    %cst_12 = arith.constant dense<0.000000e+00> : vector<32x32xf32>
    %15 = tpu.matmul %7, %10, %cst_12 {dimension_numbers = #tpu.dot_dimension_numbers<[1], [1], [0], [0], [0, 0, 1, 0], [], []>} : vector<32x32xbf16>, vector<32x32xbf16>, vector<32x32xf32> -> vector<32x32xf32>
    %c0_13 = arith.constant 0 : index
    %c0_14 = arith.constant 0 : index
    %16 = vector.load %arg8[%c0_13, %c0_14] : memref<32x32xf32, #tpu.memory_space<vmem>>, vector<32x32xf32>
    %17 = arith.addf %15, %16 : vector<32x32xf32>
    %cst_15 = arith.constant dense<0xFF800000> : vector<32xf32>
    %18 = vector.multi_reduction <maximumf>, %17, %cst_15 [1] : vector<32x32xf32> to vector<32xf32>
    %19 = vector.shape_cast %18 : vector<32xf32> to vector<32x1xf32>
    %20 = vector.broadcast %19 : vector<32x1xf32> to vector<32x32xf32>
    %21 = arith.subf %17, %20 : vector<32x32xf32>
    %22 = math.exp %21 : vector<32x32xf32>
    %cst_16 = arith.constant dense<0.000000e+00> : vector<32xf32>
    %23 = vector.multi_reduction <add>, %22, %cst_16 [1] : vector<32x32xf32> to vector<32xf32>
    %24 = vector.shape_cast %23 : vector<32xf32> to vector<32x1xf32>
    %25 = vector.broadcast %24 : vector<32x1xf32> to vector<32x32xf32>
    %26 = arith.divf %22, %25 : vector<32x32xf32>
    %27 = arith.truncf %26 : vector<32x32xf32> to vector<32x32xbf16>
    %cst_17 = arith.constant dense<0.000000e+00> : vector<32x32xf32>
    %28 = tpu.matmul %27, %14, %cst_17 {dimension_numbers = #tpu.dot_dimension_numbers<[1], [0], [0], [1], [0, 0, 1, 1], [], []>} : vector<32x32xbf16>, vector<32x32xbf16>, vector<32x32xf32> -> vector<32x32xf32>
    %29 = vector.extract_strided_slice %28 {offsets = [0, 0], sizes = [8, 32], strides = [1, 1]} : vector<32x32xf32> to vector<8x32xf32>
    %30 = vector.extract_strided_slice %28 {offsets = [8, 0], sizes = [8, 32], strides = [1, 1]} : vector<32x32xf32> to vector<8x32xf32>
    %31 = arith.addf %29, %30 : vector<8x32xf32>
    %32 = vector.extract_strided_slice %28 {offsets = [16, 0], sizes = [8, 32], strides = [1, 1]} : vector<32x32xf32> to vector<8x32xf32>
    %33 = arith.addf %31, %32 : vector<8x32xf32>
    %34 = vector.extract_strided_slice %28 {offsets = [24, 0], sizes = [8, 32], strides = [1, 1]} : vector<32x32xf32> to vector<8x32xf32>
    %35 = arith.addf %33, %34 : vector<8x32xf32>
    %36 = arith.truncf %35 : vector<8x32xf32> to vector<8x32xbf16>
    %c0_18 = arith.constant 0 : index
    %c0_19 = arith.constant 0 : index
    %37 = vector.load %arg5[%c0_18, %c0_19] : memref<32x32xbf16, #tpu.memory_space<vmem>>, vector<32x32xbf16>
    %cst_20 = arith.constant dense<0.000000e+00> : vector<8x32xf32>
    %38 = tpu.matmul %36, %37, %cst_20 {dimension_numbers = #tpu.dot_dimension_numbers<[1], [0], [0], [1], [0, 0, 1, 1], [], []>} : vector<8x32xbf16>, vector<32x32xbf16>, vector<8x32xf32> -> vector<8x32xf32>
    %c0_21 = arith.constant 0 : index
    %c0_22 = arith.constant 0 : index
    %39 = vector.load %arg6[%c0_21, %c0_22] : memref<1x32xf32, #tpu.memory_space<vmem>>, vector<1x32xf32>
    %40 = vector.broadcast %39 : vector<1x32xf32> to vector<8x32xf32>
    %41 = arith.addf %38, %40 : vector<8x32xf32>
    %c0_23 = arith.constant 0 : index
    %c0_24 = arith.constant 0 : index
    %c0_25 = arith.constant 0 : index
    %42 = vector.load %arg9[%c0_23, %c0_24, %c0_25] : memref<1x8x32xf32, #tpu.memory_space<vmem>>, vector<1x8x32xf32>
    %43 = vector.shape_cast %42 : vector<1x8x32xf32> to vector<8x32xf32>
    %44 = vector.shape_cast %41 : vector<8x32xf32> to vector<1x8x32xf32>
    tpu.vector_store %arg9[%c0_23, %c0_24, %c0_25], %44 {strides = array<i32>} : memref<1x8x32xf32, #tpu.memory_space<vmem>>, vector<1x8x32xf32>,
    return
  }
  func.func @transform_0(%arg0: i32) -> (i32, i32, i32) {
    %c0_i32 = arith.constant 0 : i32
    %c0_i32_0 = arith.constant 0 : i32
    %c0_i32_1 = arith.constant 0 : i32
    return %arg0, %c0_i32, %c0_i32_0 : i32, i32, i32
  }
  func.func @transform_1(%arg0: i32) -> (i32, i32) {
    %c0_i32 = arith.constant 0 : i32
    %c0_i32_0 = arith.constant 0 : i32
    %c0_i32_1 = arith.constant 0 : i32
    return %c0_i32, %c0_i32_0 : i32, i32
  }
  func.func @transform_2(%arg0: i32) -> (i32, i32) {
    %c0_i32 = arith.constant 0 : i32
    %c0_i32_0 = arith.constant 0 : i32
    %c0_i32_1 = arith.constant 0 : i32
    return %c0_i32, %c0_i32_0 : i32, i32
  }
  func.func @transform_3(%arg0: i32) -> (i32, i32) {
    %c0_i32 = arith.constant 0 : i32
    %c0_i32_0 = arith.constant 0 : i32
    %c0_i32_1 = arith.constant 0 : i32
    return %c0_i32, %c0_i32_0 : i32, i32
  }
  func.func @transform_4(%arg0: i32) -> (i32, i32) {
    %c0_i32 = arith.constant 0 : i32
    %c0_i32_0 = arith.constant 0 : i32
    %c0_i32_1 = arith.constant 0 : i32
    return %c0_i32, %c0_i32_0 : i32, i32
  }
  func.func @transform_5(%arg0: i32) -> (i32, i32) {
    %c0_i32 = arith.constant 0 : i32
    %c0_i32_0 = arith.constant 0 : i32
    %c0_i32_1 = arith.constant 0 : i32
    return %c0_i32, %c0_i32_0 : i32, i32
  }
  func.func @transform_6(%arg0: i32) -> (i32, i32) {
    %c0_i32 = arith.constant 0 : i32
    %c0_i32_0 = arith.constant 0 : i32
    %c0_i32_1 = arith.constant 0 : i32
    return %c0_i32, %c0_i32_0 : i32, i32
  }
  func.func @transform_7(%arg0: i32) -> (i32, i32) {
    %c0_i32 = arith.constant 0 : i32
    %c0_i32_0 = arith.constant 0 : i32
    %c0_i32_1 = arith.constant 0 : i32
    return %c0_i32, %c0_i32_0 : i32, i32
  }
  func.func @transform_8(%arg0: i32) -> (i32, i32, i32) {
    %c0_i32 = arith.constant 0 : i32
    %c0_i32_0 = arith.constant 0 : i32
    %c0_i32_1 = arith.constant 0 : i32
    return %arg0, %c0_i32, %c0_i32_0 : i32, i32, i32
  }
}

</mosaic_0001>

<bundles_post_ra>
// kernel: tpu_custom_call.1
= control target key start
LH: loop header
LB: loop body
LE: loop exit
PB: predicated region body
PF: predicated region fallthrough
CT: control target
= control target key end

     0   :  { %s1883_s0 = inlined_call_operand.hbm [shape: bf16[2,8,32], index: 0, kind: input, shape index: {}]   ;;  %s1884_s1 = inlined_call_operand.hbm [shape: bf16[32,32], index: 1, kind: input, shape index: {}]   ;;  %s1885_s2 = inlined_call_operand.hbm [shape: bf16[32,32], index: 2, kind: input, shape index: {}]   ;;  %s1886_s3 = inlined_call_operand.hbm [shape: bf16[32,32], index: 3, kind: input, shape index: {}]   ;;  %s1887_s4 = inlined_call_operand.hbm [shape: bf16[32,32], index: 4, kind: input, shape index: {}]   ;;  %s1888_s5 = inlined_call_operand.vmem [shape: f32[1,32], index: 5, kind: input, shape index: {}]   ;;  %s1889_s6 = inlined_call_operand.hbm [shape: f32[32,32], index: 6, kind: input, shape index: {}]   ;;  %s1890_s7 = inlined_call_operand.hbm [shape: f32[32,32], index: 7, kind: input, shape index: {}]   ;;  %s1891_s8 = inlined_call_operand.hbm [shape: f32[2,8,32], index: 8, kind: output, shape index: {}]  }
   0x1   :  { %1896 = sst [smem:[#allocation20_spill]] %s1884_s1 }
   0x2   :  { %1897 = sst [smem:[#allocation21_spill]] %s1885_s2 }
   0x3   :  { %1898 = sst [smem:[#allocation22_spill]] %s1886_s3 }
   0x4   :  { %13 = vsyncpa [#allocation3], 0 }
   0x5   :  { %15 = vsyncpa [#allocation3 + $0x1], 0 }
   0x6   :  { %16 = vsyncpa [#allocation6], 0 }
   0x7   :  { %17 = vsyncpa [#allocation9], 0 }
   0x8   :  { %18 = vsyncpa [#allocation12], 0 }
   0x9   :  { %19 = vsyncpa [#allocation4], 0 }
   0xa   :  { %21 = vsyncpa [#allocation4 + $0x1], 0  ;;  %s1588_s27 = smov 0   ;;  %s1590_s28 = smov 0  }
   0xb   :  { %s1592_s29 = smov 0   ;;  %s1594_s30 = smov 0  }
   0xc LB: > { %s1529_s9 = smov [#allocation5]   ;;  %s1609_s11 = sadd.s32 4294967295, %s1527_s30   ;;  %s1527_s30 = sphi %s1594_s30, %s1924_s30   ;;  %s1523_s29 = sphi %s1592_s29, %s1923_s29   ;;  %s1519_s28 = sphi %s1590_s28, %s1922_s28   ;;  %s1515_s27 = sphi %s1588_s27, %s1921_s27  }
   0xd   : > { %s243_s10 = sshll.u32 %s1529_s9, 4  ;;  %p1012_p0 = scmp.ge.s32.totalorder %s1527_s30, 1  ;;  %s244_s10 = int_to_ptr.vmem [resolvable:$true] %s243_s10 }
   0xe   : > { %p1892_p1 = scmp.eq.s32.totalorder %s1609_s11, 0  ;;  %p231_p2 = scmp.lt.s32.totalorder %s1527_s30, 3 }
   0xf   : > { %s1530_s13 = smov [#allocation8]   ;;  %s1531_s16 = smov [#allocation11]  }
  0x10   : > { %p1614_p3 = pnand %p1012_p0, %p231_p2  ;;  %s269_s14 = sshll.u32 %s1530_s13, 4  ;;  %s1627_s14 = int_to_ptr.vmem [resolvable:$true] %s269_s14 }
  0x11   : > { %s298_s17 = sshll.u32 %s1531_s16, 4  ;;  %s1278_s19 = scalar_lea.vmem %s244_s10, 256  ;;  %s1629_s17 = int_to_ptr.vmem [resolvable:$true] %s298_s17 }
  0x12   : > { %s1899_s12 = scalar_select %p1614_p3, 1, 0 }
  0x13   : > { %p1157_p5 = pneg %p1614_p3  ;;  %p1279_p8 = scmp.ne.s32.totalorder %s244_s10, %s1278_s19 }
  0x14   : > { %p1286_p11 = scmp.lt.s32.totalorder %s244_s10, %s244_s10  ;;  %p1287_p12 = scmp.lt.s32.totalorder %s1278_s19, %s1278_s19 }
  0x15   : > { %p1623_p6 = pnand %p1157_p5, %p1892_p1 }
  0x16   : > { %p1288_p13 = por %p1287_p12, %p1286_p11 }
  0x17   : > { %p1633_p7 = pneg %p1623_p6 }
  0x19   : > { %p1281_p9 = pnand %p1279_p8, %p1633_p7 }
  0x1b   : > { %p1282_p10 = pneg %p1281_p9 }
  0x1d   : > { %p1289_p0 = pnand %p1288_p13, %p1282_p10 }
  0x1f   : > { %1292 = shalt.err (!%p1289_p0)
}
  0x20   : > { %s1532_s20 = smov 64   ;;  %s1533_s21 = smov 4  }
  0x21   : > { %s1902_s1 = sld [smem:[#allocation20_spill]]  ;;  %s1304_s24 = scalar_lea.vmem %s1627_s14, 256 }
  0x22   : > { %p1305_p2 = scmp.ne.s32.totalorder %s1627_s14, %s1304_s24  ;;  %p1312_p9 = scmp.lt.s32.totalorder %s1627_s14, %s1627_s14 }
  0x23   : > { %p1313_p10 = scmp.lt.s32.totalorder %s1304_s24, %s1304_s24 }
  0x24   : > { %p1307_p5 = pnand %p1305_p2, %p1633_p7 }
  0x25   : > { %p1314_p11 = por %p1313_p10, %p1312_p9 }
  0x26   : > { %p1308_p8 = pneg %p1307_p5 }
  0x27   : > { %1160 = dma.hbm_to_vmem [thread:$0]  (!%p1623_p6), %s1902_s1, 256, %s244_s10, [#allocation6], %s1532_s20, %s1532_s20, %s1533_s21  }
  0x28   : > { %p1315_p12 = pnand %p1314_p11, %p1308_p8 }
  0x2a   : > { %1318 = shalt.err (!%p1315_p12)
}
  0x2b   : > { %s1903_s3 = sld [smem:[#allocation22_spill]]  ;;  %s1330_s9 = scalar_lea.vmem %s1629_s17, 512 }
  0x2c   : > { %p1331_p13 = scmp.ne.s32.totalorder %s1629_s17, %s1330_s9  ;;  %p1338_p5 = scmp.lt.s32.totalorder %s1629_s17, %s1629_s17 }
  0x2d   : > { %p1339_p8 = scmp.lt.s32.totalorder %s1330_s9, %s1330_s9 }
  0x2e   : > { %p1333_p0 = pnand %p1331_p13, %p1633_p7 }
  0x2f   : > { %p1340_p9 = por %p1339_p8, %p1338_p5 }
  0x30   : > { %p1334_p2 = pneg %p1333_p0 }
  0x31   : > { %1166 = dma.hbm_to_vmem [thread:$0]  (!%p1623_p6), %s1903_s3, 256, %s1627_s14, [#allocation9], %s1532_s20, %s1532_s20, %s1533_s21  }
  0x32   : > { %p1341_p10 = pnand %p1340_p9, %p1334_p2 }
  0x34   : > { %1344 = shalt.err (!%p1341_p10)
}
  0x35   : > { %s1534_s10 = smov 128   ;;  %s1535_s13 = smov 8  }
  0x36   : > { %1172 = dma.hbm_to_vmem [thread:$0]  (!%p1623_p6), %s1889_s6, 512, %s1629_s17, [#allocation12], %s1534_s10, %s1534_s10, %s1535_s13  }
  0x37   : > { %s1536_s19 = smov [#allocation7]   ;;  %s1537_s23 = smov [#allocation10]  }
  0x38   : > { %s256_s22 = sshll.u32 %s1536_s19, 4  ;;  %s282_s24 = sshll.u32 %s1537_s23, 4  ;;  %s257_s22 = int_to_ptr.vmem [resolvable:$true] %s256_s22  ;;  %s283_s24 = int_to_ptr.vmem [resolvable:$true] %s282_s24 }
  0x39   : > { %s1356_s25 = scalar_lea.vmem %s257_s22, 256  ;;  %p1364_p0 = scmp.lt.s32.totalorder %s257_s22, %s257_s22 }
  0x3a   : > { %p1357_p11 = scmp.ne.s32.totalorder %s257_s22, %s1356_s25  ;;  %p1365_p2 = scmp.lt.s32.totalorder %s1356_s25, %s1356_s25 }
  0x3c   : > { %p1359_p12 = pnand %p1357_p11, %p1633_p7  ;;  %p1366_p5 = por %p1365_p2, %p1364_p0 }
  0x3e   : > { %p1360_p13 = pneg %p1359_p12 }
  0x40   : > { %p1367_p8 = pnand %p1366_p5, %p1360_p13 }
  0x42   : > { %1370 = shalt.err (!%p1367_p8)
}
  0x43   : > { %s1904_s2 = sld [smem:[#allocation21_spill]]  ;;  %s1382_s9 = scalar_lea.vmem %s283_s24, 256 }
  0x44   : > { %p1383_p9 = scmp.ne.s32.totalorder %s283_s24, %s1382_s9  ;;  %p1390_p12 = scmp.lt.s32.totalorder %s283_s24, %s283_s24 }
  0x45   : > { %p1391_p0 = scmp.lt.s32.totalorder %s1382_s9, %s1382_s9 }
  0x46   : > { %p1385_p10 = pnand %p1383_p9, %p1633_p7 }
  0x47   : > { %p1392_p13 = por %p1391_p0, %p1390_p12 }
  0x48   : > { %p1386_p11 = pneg %p1385_p10 }
  0x49   : > { %1163 = dma.hbm_to_vmem [thread:$0]  (!%p1623_p6), %s1904_s2, 256, %s257_s22, [#allocation6], %s1532_s20, %s1532_s20, %s1533_s21  }
  0x4a   : > { %p1393_p2 = pnand %p1392_p13, %p1386_p11 }
  0x4c   : > { %1396 = shalt.err (!%p1393_p2)
}
  0x4d   : > { %1169 = dma.hbm_to_vmem [thread:$0]  (!%p1623_p6), %s1887_s4, 256, %s283_s24, [#allocation9], %s1532_s20, %s1532_s20, %s1533_s21  }
  0x4e   : > { %s1538_s19 = smov [#allocation13]  }
  0x4f   : > { %s311_s22 = sshll.u32 %s1538_s19, 4  ;;  %s312_s22 = int_to_ptr.vmem [resolvable:$true] %s311_s22 }
  0x50   : > { %s1408_s23 = scalar_lea.vmem %s312_s22, 512  ;;  %p1416_p10 = scmp.lt.s32.totalorder %s312_s22, %s312_s22 }
  0x51   : > { %p1409_p5 = scmp.ne.s32.totalorder %s312_s22, %s1408_s23  ;;  %p1417_p11 = scmp.lt.s32.totalorder %s1408_s23, %s1408_s23 }
  0x53   : > { %p1411_p8 = pnand %p1409_p5, %p1633_p7  ;;  %p1418_p12 = por %p1417_p11, %p1416_p10 }
  0x55   : > { %p1412_p9 = pneg %p1411_p8 }
  0x57   : > { %p1419_p0 = pnand %p1418_p12, %p1412_p9 }
  0x59   : > { %1422 = shalt.err (!%p1419_p0)
}
  0x5a   : > { %1175 = dma.hbm_to_vmem [thread:$0]  (!%p1623_p6), %s1890_s7, 512, %s312_s22, [#allocation12], %s1534_s10, %s1534_s10, %s1535_s13  }
  0x5b   : > { %s1011_s15 = sadd.s32 4294967294, %s1527_s30   ;;  %s1709_s18 = sadd.s32 1, %s1527_s30  }
  0x5c   : > { %s31_s21 = ssub.s32 %s1527_s30, %s1709_s18  ;;  %s34_s24 = sadd.s32 1, %s1523_s29 }
  0x5d   : > { %p32_p7 = scmp.eq.s32.totalorder %s31_s21, 0  ;;  %p41_p13 = scmp.ne.s32.totalorder %s1523_s29, %s1519_s28 }
  0x5e   : > { %p42_p2 = scmp.eq.s32.totalorder %s1527_s30, 0  ;;  %p47_p5 = scmp.ne.s32.totalorder %s1519_s28, %s1515_s27 }
  0x5f   : > { %s1720_s17 = scalar_select %p32_p7, %s1523_s29, %s34_s24  }
  0x60   : > { %p1722_p8 = por %p42_p2, %p41_p13  ;;  %p1728_p6 = por %p1892_p1, %p47_p5 }
  0x61   : > { %p218_p9 = scmp.eq.s32.totalorder %s1609_s11, 1  ;;  %p224_p10 = scmp.eq.s32.totalorder %s1011_s15, 1 }
  0x62   : > { %s1906_s10 = scalar_select %p1728_p6, 1, 0 }
  0x63   : > { %p1190_p11 = scmp.lt.s32.totalorder %s1527_s30, 2  ;;  %s325_s13 = sand.u32 1, %s1523_s29  }
  0x64   : > { %p1735_p12 = por %p218_p9, %p41_p13  ;;  %p1739_p0 = por %p224_p10, %p47_p5 }
  0x65   : > { %s1020_s16 = sshll.u32 %s325_s13, 2  ;;  %s1021_s19 = sshll.u32 %s1527_s30, 6 }
  0x66   : > { %s1907_s9 = scalar_select %p1735_p12, 1, 0 }
  0x67   : > { %s1908_s14 = scalar_select %p1739_p0, 1, 0 }
  0x68   : > { %s1747_s25 = scalar_lea.hbm %s1883_s0, %s1021_s19  ;;  %s329_s20 = scalar_lea.vmem [#allocation2], %s1020_s16 }
  0x69   : > { %s336_s15 = sshll.u32 %s329_s20, 4  ;;  %p1751_p7 = pnand %p1190_p11, %p1722_p8  ;;  %s337_s15 = int_to_ptr.vmem [resolvable:$true] %s336_s15 }
  0x6a   : > { %s326_s24 = scalar_lea.sflag [#allocation3], %s325_s13  ;;  %s1423_s1 = scalar_lea.hbm %s1747_s25, 64 }
  0x6b   : > { %p1424_p13 = scmp.ne.s32.totalorder %s1747_s25, %s1423_s1  ;;  %p1425_p2 = pneg %p1751_p7 }
  0x6c   : > { %s1428_s23 = scalar_lea.hbm %s1883_s0, 128  ;;  %p1429_p10 = scmp.lt.s32.totalorder %s1747_s25, %s1883_s0 }
  0x6d   : > { %p1426_p5 = pnand %p1425_p2, %p1424_p13  ;;  %p1430_p8 = scmp.lt.s32.totalorder %s1428_s23, %s1423_s1 }
  0x6f   : > { %p1427_p9 = pneg %p1426_p5  ;;  %p1431_p11 = por %p1430_p8, %p1429_p10 }
  0x71   : > { %p1432_p4 = pnand %p1431_p11, %p1427_p9 }
  0x73   : > { %1435 = shalt.err (!%p1432_p4)
}
  0x74   : > { %s1436_s26 = scalar_lea.vmem %s337_s15, 64  ;;  %s1539_s13 = smov [#allocation2]  }
  0x75   : > { %p1437_p1 = scmp.ne.s32.totalorder %s337_s15, %s1436_s26  ;;  %s1441_s2 = sshll.u32 %s1539_s13, 4  ;;  %s1442_s2 = int_to_ptr.vmem [resolvable:$false] %s1441_s2 }
  0x76   : > { %s1443_s3 = scalar_lea.vmem %s1442_s2, 128  ;;  %p1444_p13 = scmp.lt.s32.totalorder %s337_s15, %s1442_s2 }
  0x77   : > { %p1439_p0 = pnand %p1437_p1, %p1425_p2  ;;  %p1445_p5 = scmp.lt.s32.totalorder %s1443_s3, %s1436_s26 }
  0x79   : > { %p1440_p12 = pneg %p1439_p0  ;;  %p1446_p6 = por %p1445_p5, %p1444_p13 }
  0x7b   : > { %p1447_p3 = pnand %p1446_p6, %p1440_p12 }
  0x7d   : > { %1450 = shalt.err (!%p1447_p3)
}
  0x7e   : > { %1179 = dma.hbm_to_vmem [thread:$0]  (!%p1751_p7), %s1747_s25, 64, %s337_s15, %s326_s24  }
  0x7f   : > { %p1910_p9 = scmp.ne.s32.totalorder %s1899_s12, 0 }
  0x80   : > { %s1772_s1 = sand.u32 (!%p1910_p9), 1, %s1519_s28   ;;  %p1911_p1 = scmp.ne.s32.totalorder (!%p1910_p9), %s1906_s10, 0 }
  0x81   : > { %345 = sbr.rel (%p1910_p9) target bundleno = 1303 (0x517), region = 52  ;;  %s1023_s19 = sshll.u32 (!%p1910_p9), %s1772_s1, 2 }
  0x82   : > { %s348_s22 = scalar_lea.sflag (!%p1910_p9), [#allocation3], %s1772_s1  ;;  %s351_s2 = scalar_lea.vmem (!%p1910_p9), [#allocation2], %s1023_s19 }
  0x86   : > { %1494 = dma.done.wait (%p1911_p1), %s348_s22, 64  }
  0x87   : > { %1496 = vsyncadd (%p1911_p1), %s348_s22, 4294967232  ;;  %p1912_p3 = scmp.eq.s32.totalorder %s1609_s11, 0 }
  0x89   : > { %1498 = dma.done.wait (%p1912_p3), [#allocation6], 512   ;;  %p1913_p4 = pmov %p1912_p3 }
  0x8a   : > { %p1914_p6 = pmov %p1912_p3 }
  0x8b   : > { %1500 = vsyncadd (%p1913_p4), [#allocation6], 4294966784 }
  0x8c   : > { %1502 = dma.done.wait (%p1914_p6), [#allocation9], 512   ;;  %p1915_p12 = pmov %p1912_p3 }
  0x8d   : > { %p1916_p0 = pmov %p1912_p3 }
  0x8e   : > { %1504 = vsyncadd (%p1915_p12), [#allocation9], 4294966784 }
  0x8f   : > { %1506 = dma.done.wait (%p1916_p0), [#allocation12], 1024   ;;  %p1917_p7 = pmov %p1916_p0 }
  0x90   : > { %v1242_v0 = vld [vmem:[#allocation7 + $0x8] sm:$0xff]   ;;  %v1243_v1 = vld [vmem:[#allocation7] sm:$0xff]   ;;  %v1244_v2 = vld [vmem:[#allocation5 + $0x8] sm:$0xff]   ;;  %vm413_vm0 = vcmask 1043456   ;;  %vm437_vm1 = vcmask 261120   ;;  %vm1541_vm2 = vmmov 0  }
  0x91   : > { %1508 = vsyncadd (%p1917_p7), [#allocation12], 4294966272  ;;  %1087 = vmatprep.subr.bf16.mxu1 %v1242_v0  ;;  %v409_v3 = vld [vmem:[%s351_s2] sm:$0xf]  ;;  %1079 = vmatprep.subr.bf16.mxu0 %v1244_v2  ;;  %v1246_v5 = vld [vmem:[#allocation5] sm:$0xff]   ;;  %s1030_s3 = sshll.u32 %s1772_s1, 3 }
  0x92   : > { %1088 = vmatpush3.bf16.msra.mxu1 %v1242_v0  ;;  %v1031_v4 = vcombine.low %v409_v3, %v409_v3  ;;  %1080 = vmatpush3.bf16.msra.mxu0 %v1244_v2  ;;  %v1797_v11 = vld [vmem:[#allocation11] sm:$0xff]  ;;  %v1799_v16 = vld [vmem:[#allocation11 + $0x8] sm:$0xff]  ;;  %v1807_v23 = vld [vmem:[#allocation11 + $0x10] sm:$0xff]  ;;  %s1053_s25 = sshll.u32 %s1609_s11, 7  ;;  %s407_s15 = scalar_lea.vmem [#allocation14], %s1030_s3 }
  0x93   : > { %1089 = vmatprep.subr.bf16.mxu1 %v1243_v1  ;;  %1081 = vmatprep.subr.bf16.mxu0 %v1246_v5  ;;  %v1809_v24 = vld [vmem:[#allocation11 + $0x18] sm:$0xff]  ;;  %v1247_v29 = vld [vmem:[#allocation8 + $0x8] sm:$0xff]   ;;  %v1248_v30 = vld [vmem:[#allocation8] sm:$0xff]   ;;  %s884_s21 = sshll.u32 %s407_s15, 4  ;;  %s1839_s16 = scalar_lea.hbm %s1891_s8, %s1053_s25  ;;  %s1841_s21 = int_to_ptr.vmem [resolvable:$true] %s884_s21 }
  0x94   : > { %v416_v6 = vsel %vm413_vm0, %v409_v3, %v1031_v4  ;;  %v635_v31 = vld [vmem:[#allocation13 + $0x10] sm:$0xff]  ;;  %v633_v33 = vld [vmem:[#allocation13] sm:$0xff]  ;;  %v636_v36 = vld [vmem:[#allocation13 + $0x18] sm:$0xff]  ;;  %s871_s20 = scalar_lea.sflag [#allocation4], %s1772_s1  ;;  %s1451_s11 = scalar_lea.vmem %s1841_s21, 128 }
  0x95   : > { %1091 = vmatprep.mubr.msk.bf16.mxu1 %vm437_vm1, %v416_v6  ;;  %1083 = vmatprep.mubr.msk.bf16.mxu0 %vm437_vm1, %v416_v6  ;;  %v634_v40 = vld [vmem:[#allocation13 + $0x8] sm:$0xff]  ;;  %p1452_p2 = scmp.ne.s32.totalorder %s1841_s21, %s1451_s11  ;;  %p1918_p10 = scmp.ne.s32.totalorder %s1907_s9, 0 }
  0x96   : > { %1090 = vmatpush3.bf16.msra.mxu1 %v1243_v1  ;;  %1082 = vmatpush3.bf16.msra.mxu0 %v1246_v5  ;;  %s1542_s26 = smov [#allocation14]  }
  0x97   : > { %1095 = vmatprep.subr.bf16.mxu0 %v1247_v29  ;;  %p1453_p8 = pnand %p1452_p2, %p1918_p10  ;;  %s1455_s13 = sshll.u32 %s1542_s26, 4  ;;  %s1456_s13 = int_to_ptr.vmem [resolvable:$false] %s1455_s13 }
  0x98   : > { %s1457_s19 = scalar_lea.vmem %s1456_s13, 256  ;;  %p1458_p13 = scmp.lt.s32.totalorder %s1841_s21, %s1456_s13 }
  0x99   : > { %1092 = vmatmul.mubr.msk.bf16.vlgmr.msra.gmra.mxu1 %vm437_vm1, %v416_v6  ;;  %1084 = vmatmul.mubr.msk.bf16.vlgmr.msra.gmra.mxu0 %vm437_vm1, %v416_v6  ;;  %p1454_p11 = pneg %p1453_p8  ;;  %p1459_p5 = scmp.lt.s32.totalorder %s1457_s19, %s1451_s11 }
  0x9a   : > { %1099 = vmatprep.mubr.msk.bf16.mxu0 %vm437_vm1, %v416_v6  ;;  %1096 = vmatpush3.bf16.msra.mxu0 %v1247_v29  ;;  %v1250_v29 = vld [vmem:[#allocation10] sm:$0xff]  }
  0x9b   : > { %1097 = vmatprep.subr.bf16.mxu0 %v1248_v30  ;;  %p1460_p9 = por %p1459_p5, %p1458_p13 }
  0x9d   : > { %p1461_p1 = pnand %p1460_p9, %p1454_p11 }
  0x9e   : > { %1098 = vmatpush3.bf16.msra.mxu0 %v1248_v30 }
  0xa1   : > { %1100 = vmatmul.mubr.msk.bf16.vlgmr.msra.gmra.mxu0 %vm437_vm1, %v416_v6 }
 0x159   : > { %v1093_v7 = vpop.f32.mrf.mxu1  ;;  %v1085_v9 = vpop.f32.mrf.mxu0 }
 0x15a   : > { %v491_v26 = vmul.f32 %v1085_v9, %v1807_v23 }
 0x15b   : > { %v545_v8 = vpop.f32.mrf.mxu1  ;;  %v474_v12 = vpop.f32.mrf.mxu0 }
 0x15c   : > { %v489_v19 = vmul.f32 %v474_v12, %v1797_v11 }
 0x15d   : > { %v1094_v10 = vpop.f32.mrf.mxu1  ;;  %v1086_v15 = vpop.f32.mrf.mxu0 }
 0x15e   : > { %v561_v13 = vpack.c.bf16 %v1094_v10, %v1093_v7  ;;  %v492_v27 = vmul.f32 %v1086_v15, %v1809_v24 }
 0x15f   : > { %v548_v14 = vpop.f32.mrf.mxu1  ;;  %v477_v20 = vpop.f32.mrf.mxu0 }
 0x160   : > { %v647_v17 = vsel %vm437_vm1, %v561_v13, 0  ;;  %v560_v18 = vpack.c.bf16 %v548_v14, %v545_v8  ;;  %1127 = vmatprep.subr.msk.bf16.mxu1 %vm437_vm1, %v561_v13  ;;  %v490_v21 = vmul.f32 %v477_v20, %v1799_v16  ;;  %v494_v28 = vpack.c.bf16 %v492_v27, %v491_v26  ;;  %v1249_v27 = vld [vmem:[#allocation10 + $0x8] sm:$0xff]  }
 0x161   : > { %1104 = vmatpush3.bf16.xpose.msra.mxu1 %v647_v17  ;;  %v1101_v2 = vpop.f32.mrf.mxu0 }
 0x162   : > { %1128 = vmatprep.subr.msk.bf16.mxu1 %vm437_vm1, %v560_v18  ;;  %v493_v22 = vpack.c.bf16 %v490_v21, %v489_v19  ;;  %v644_v25 = vsel %vm437_vm1, %v560_v18, 0  ;;  %v629_v5 = vmul.f32 %v1101_v2, %v1807_v23 }
 0x163   : > { %v612_v4 = vpop.f32.mrf.mxu0 }
 0x164   : > { %1107 = vmatprep.mubr.msk.bf16.mxu1 %vm437_vm1, %v493_v22  ;;  %v627_v9 = vmul.f32 %v612_v4, %v1797_v11 }
 0x165   : > { %v1102_v6 = vpop.f32.mrf.mxu0 }
 0x166   : > { %v630_v7 = vmul.f32 %v1102_v6, %v1809_v24 }
 0x167   : > { %v615_v10 = vpop.f32.mrf.mxu0 }
 0x168   : > { %v632_v8 = vpack.c.bf16 %v630_v7, %v629_v5  ;;  %v628_v12 = vmul.f32 %v615_v10, %v1799_v16 }
 0x169   : > { %1106 = vmatpush3.bf16.xpose.msra.mxu1 %v644_v25 }
 0x16a   : > { %1111 = vmatprep.subr.bf16.mxu0 %v632_v8  ;;  %v631_v13 = vpack.c.bf16 %v628_v12, %v627_v9 }
 0x16b   : > { %1112 = vmatpush3.bf16.msra.mxu0 %v632_v8 }
 0x16c   : > { %1113 = vmatprep.subr.bf16.mxu0 %v631_v13 }
 0x16f   : > { %1114 = vmatpush3.bf16.msra.mxu0 %v631_v13 }
 0x170   : > { %1108 = vmatmul.mubr.msk.bf16.vlgmr.msra.gmra.mxu1 %vm437_vm1, %v494_v28  ;;  %v1540_v28 = vmov 0.0  }
 0x171   : > { %1119 = vmatprep.subr.bf16.mxu0 %v1540_v28 }
 0x230   : > { %v1109_v32 = vpop.f32.mrf.mxu1 }
 0x231   : > { %v692_v34 = vadd.f32 %v1109_v32, %v635_v31 }
 0x232   : > { %v683_v35 = vpop.f32.mrf.mxu1 }
 0x233   : > { %v684_v37 = vadd.f32 %v683_v35, %v633_v33  ;;  %v704_v38 = vsel %vm437_vm1, %v692_v34, -inf }
 0x234   : > { %705 = vmax.xlane.f32.xlu1 %v704_v38  ;;  %v1110_v39 = vpop.f32.mrf.mxu1  ;;  %v1048_v38 = vld [vmem:[%s1888_s5] ss:$0 sm:$0xff] }
 0x235   : > { %v695_v41 = vadd.f32 %v1110_v39, %v636_v36  ;;  %v698_v42 = vsel %vm437_vm1, %v684_v37, -inf }
 0x236   : > { %v686_v43 = vpop.f32.mrf.mxu1  ;;  %699 = vmax.xlane.f32.xlu0 %v698_v42 }
 0x237   : > { %v687_v44 = vadd.f32 %v686_v43, %v634_v40  ;;  %v707_v45 = vsel %vm437_vm1, %v695_v41, -inf }
 0x238   : > { %708 = vmax.xlane.f32.xlu1 %v707_v45 }
 0x239   : > { %v701_v46 = vsel %vm437_vm1, %v687_v44, -inf }
 0x23a   : > { %702 = vmax.xlane.f32.xlu0 %v701_v46 }
 0x2bd   : > { %v706_v47 = vpop.xlane.xlu1 %705 }
 0x2be   : > { %v712_v48 = vsub.f32 %v692_v34, %v706_v47 }
 0x2bf   : > { %v700_v49 = vpop.xlane.xlu0 %699 }
 0x2c0   : > { %v710_v50 = vsub.f32 %v684_v37, %v700_v49  ;;  %v718_v52 = vmul.f32 1.442695, %v712_v48 }
 0x2c1   : > { %v709_v51 = vpop.xlane.xlu1 %708 }
 0x2c2   : > { %v714_v53 = vmul.f32 1.442695, %v710_v50  ;;  %v713_v54 = vsub.f32 %v695_v41, %v709_v51 }
 0x2c3   : > { %v703_v55 = vpop.xlane.xlu0 %702 }
 0x2c4   : > { %1251 = vpow2.f32 %v714_v53  ;;  %v711_v56 = vsub.f32 %v687_v44, %v703_v55  ;;  %v720_v57 = vmul.f32 1.442695, %v713_v54 }
 0x2c5   : > { %1253 = vpow2.f32 %v718_v52 }
 0x2c6   : > { %v716_v58 = vmul.f32 1.442695, %v711_v56 }
 0x2c8   : > { %1255 = vpow2.f32 %v716_v58 }
 0x2c9   : > { %1257 = vpow2.f32 %v720_v57 }
 0x2d1   : > { %v1252_v59 = vpop.eup %1251 }
 0x2d2   : > { %v722_v60 = vsel %vm437_vm1, %v1252_v59, 0.0  ;;  %v1254_v61 = vpop.eup %1253 }
 0x2d3   : > { %723 = vadd.xlane.f32.xlu0 %v722_v60  ;;  %v728_v63 = vsel %vm437_vm1, %v1254_v61, 0.0 }
 0x2d5   : > { %v1256_v62 = vpop.eup %1255 }
 0x2d6   : > { %v725_v0 = vsel %vm437_vm1, %v1256_v62, 0.0  ;;  %v1258_v1 = vpop.eup %1257 }
 0x2d7   : > { %729 = vadd.xlane.f32.xlu0 %v728_v63  ;;  %726 = vadd.xlane.f32.xlu1 %v725_v0  ;;  %v731_v3 = vsel %vm437_vm1, %v1258_v1, 0.0 }
 0x2db   : > { %732 = vadd.xlane.f32.xlu1 %v731_v3 }
 0x35c   : > { %v724_v14 = vpop.xlane.xlu0 %723 }
 0x35d   : > { %1259 = vrcp.f32 %v724_v14 }
 0x360   : > { %v727_v15 = vpop.xlane.xlu1 %726  ;;  %v730_v17 = vpop.xlane.xlu0 %729 }
 0x361   : > { %1261 = vrcp.f32 %v727_v15 }
 0x362   : > { %1263 = vrcp.f32 %v730_v17 }
 0x364   : > { %v733_v18 = vpop.xlane.xlu1 %732 }
 0x365   : > { %1265 = vrcp.f32 %v733_v18 }
 0x36a   : > { %v1260_v19 = vpop.eup %1259 }
 0x36b   : > { %v735_v21 = vmul.f32 %v1260_v19, %v1252_v59 }
 0x36e   : > { %v1262_v20 = vpop.eup %1261 }
 0x36f   : > { %v737_v22 = vmul.f32 %v1262_v20, %v1256_v62  ;;  %v1264_v11 = vpop.eup %1263 }
 0x370   : > { %v739_v25 = vmul.f32 %v1264_v11, %v1254_v61 }
 0x371   : > { %v742_v23 = vpack.c.bf16 %v737_v22, %v735_v21 }
 0x372   : > { %v1266_v24 = vpop.eup %1265 }
 0x373   : > { %v741_v16 = vmul.f32 %v1266_v24, %v1258_v1  ;;  %1115 = vmatprep.mubr.msk.bf16.mxu0 %vm437_vm1, %v742_v23 }
 0x375   : > { %v743_v26 = vpack.c.bf16 %v741_v16, %v739_v25 }
 0x377   : > { %1116 = vmatmul.mubr.msk.bf16.vlgmr.msra.gmra.mxu0 %vm437_vm1, %v743_v26 }
 0x378   : > { %1120 = vmatpush3.bf16.msra.mxu0 %v1249_v27  ;;  %1123 = vmatprep.mubr.msk.bf16.mxu0 %vm1541_vm2, %v1540_v28 }
 0x379   : > { %1121 = vmatprep.subr.bf16.mxu0 %v1540_v28 }
 0x37c   : > { %1122 = vmatpush3.bf16.msra.mxu0 %v1250_v29 }
 0x437   : > { %v1117_v30 = vpop.f32.mrf.mxu0 }
 0x439   : > { %v784_v31 = vpop.f32.mrf.mxu0 }
 0x43b   : > { %v1118_v32 = vpop.f32.mrf.mxu0 }
 0x43d   : > { %v787_v33 = vpop.f32.mrf.mxu0 }
 0x43e   : > { %v799_v34 = vadd.f32 %v787_v33, %v784_v31 }
 0x440   : > { %v800_v35 = vadd.f32 %v1117_v30, %v799_v34 }
 0x442   : > { %v801_v36 = vadd.f32 %v1118_v32, %v800_v35 }
 0x444   : > { %v802_v37 = vpack.c.bf16 %v801_v36, %v801_v36 }
 0x446   : > { %1124 = vmatmul.mubr.msk.bf16.vlgmr.msra.gmra.mxu0 %vm437_vm1, %v802_v37 }
 0x506   : > { %v863_v39 = vpop.f32.mrf.mxu0 }
 0x507   : > { %v864_v40 = vadd.f32 %v1048_v38, %v863_v39 }
 0x508   : > { %v1125_v41 = vpop.f32.mrf.mxu0 }
 0x509   : > { %869 = vst.msk [vmem:[%s407_s15] sm:$0xff] %vm437_vm1, %v864_v40 }
 0x50a   : > { %v866_v42 = vpop.f32.mrf.mxu0 }
 0x50b   : > { %1464 = shalt.err (!%p1461_p1)
}
 0x50c   : > { %s1465_s22 = scalar_lea.hbm %s1839_s16, 128  ;;  %s1469_s3 = scalar_lea.hbm %s1891_s8, 256 }
 0x50d   : > { %p1466_p3 = scmp.ne.s32.totalorder %s1839_s16, %s1465_s22  ;;  %p1470_p12 = scmp.lt.s32.totalorder %s1839_s16, %s1891_s8 }
 0x50e   : > { %p1471_p0 = scmp.lt.s32.totalorder %s1469_s3, %s1465_s22 }
 0x50f   : > { %p1467_p4 = pnand %p1466_p3, %p1918_p10 }
 0x510   : > { %p1472_p7 = por %p1471_p0, %p1470_p12 }
 0x511   : > { %p1468_p6 = pneg %p1467_p4 }
 0x513   : > { %p1473_p2 = pnand %p1472_p7, %p1468_p6 }
 0x515   : > { %1476 = shalt.err (!%p1473_p2)
}
 0x516   : > { %1155 = dma.vmem_to_hbm [thread:$0]  (%p1918_p10), %s1841_s21, 128, %s1839_s16, %s871_s20   ;;  %v1126_v43 = vpop.f32.mrf.mxu0 }
 0x517 PF: > { %s896_s25 = sand.u32 1, %s1515_s27   ;;  %p1919_p8 = scmp.ne.s32.totalorder %s1908_s14, 0 }
 0x518   : > { %p1920_p11 = scmp.ge.s32.totalorder %s1527_s30, 2  ;;  %s897_s15 = scalar_lea.sflag [#allocation4], %s896_s25 }
 0x51a   : > { %p1181_p13 = pnand %p1920_p11, %p1919_p8 }
 0x51c   : > { %p1182_p5 = pneg %p1181_p13 }
 0x51e   : > { %1510 = dma.done.wait (%p1182_p5), %s897_s15, 128  }
 0x51f   : > { %1512 = vsyncadd (%p1182_p5), %s897_s15, 4294967168  ;;  %p24_p9 = scmp.ge.s32.totalorder %s1709_s18, 4   ;;  %s1921_s27 = smov %s1519_s28 }
 0x520   : > { %s1922_s28 = smov %s1523_s29  ;;  %s1923_s29 = smov %s1720_s17 }
 0x521   : > { %s1924_s30 = smov %s1709_s18  ;;  %26 = sbr.rel (!%p24_p9) target bundleno = 12 (0xc), region = 121 }
 0x526   :  { %902 = vsyncpa [#allocation3], 1 }
 0x527   :  { %904 = vsyncpa [#allocation3 + $0x1], 1 }
 0x528   :  { %905 = vsyncpa [#allocation6], 1 }
 0x529   :  { %906 = vsyncpa [#allocation9], 1 }
 0x52a   :  { %907 = vsyncpa [#allocation12], 1 }
 0x52b   :  { %908 = vsyncpa [#allocation4], 1 }
 0x52c   :  { %910 = vsyncpa [#allocation4 + $0x1], 1 }

</bundles_post_ra>
